<compile_context>
chip_gen: v7x
topology: tpu7x:2x2x1
jax: 0.10.0
libtpu: 0.0.40
codegen_flags: <defaults>
</compile_context>

<pallas_src>
import math

import jax
import jax.numpy as jnp
import numpy as np
from jax.experimental import pallas as pl
from jax.experimental.pallas import tpu as pltpu

_LANE = 128
_SUBLANE = 8


def _kernel(x_ref, w_ref, gate_ref, fbias_ref, o_ref):
    """One (batch, N-tile) block:  o = (x @ W) * gate + fused_bias."""
    y = jnp.dot(x_ref[0], w_ref[...], preferred_element_type=jnp.float32)   # (TN, dim_out_p)
    o_ref[0] = (y * gate_ref[0] + fbias_ref[0]).astype(o_ref.dtype)


def _round_up(v, m):
    return -(-v // m) * m


def _vmem_capacity_bytes():
    try:
        return int(pltpu.get_tpu_info().vmem_capacity_bytes)
    except Exception:
        return 64 * 1024 * 1024   # conservative fallback: v7x has 64 MiB per TensorCore


def _pick_tile(n, dim_in, dim_out_p, x_bytes, w_bytes, out_bytes, budget):
    """Largest TN (multiple of 8) whose double-buffered x/out tiles + resident W fit budget."""
    resident = dim_in * dim_out_p * w_bytes + 2 * 2 * dim_out_p * 4     # W + gate/fbias buffers
    n_cap = max(_SUBLANE, _round_up(n, _SUBLANE))
    tn = _SUBLANE
    for t in (2048, 1024, 512, 256, 128, 64, 32, 16, 8):
        per_step = 2 * t * (dim_in * x_bytes + dim_out_p * out_bytes)   # double-buffered x + out
        if resident + per_step <= budget:
            tn = t
            break
    return min(tn, n_cap)


def concat_squash_linear(ctx, x, params, *, mxu_dtype=None, interpret=False):
    """ctx: (B, dim_ctx) or (B, 1, dim_ctx); x: (B, N, dim_in).  Returns (B, N, dim_out)."""
    w, b, wg, bg, wb = params
    if ctx.ndim == 3:
        ctx = ctx[:, 0, :]
    B, N, dim_in = x.shape
    dim_out = w.shape[-1]
    out_dtype = x.dtype

    # ---- hyper-network hoisted out of the kernel (per-batch, kept in f32) -------------
    ctx32 = ctx.astype(jnp.float32)
    gate = jax.nn.sigmoid(jnp.dot(ctx32, wg.astype(jnp.float32)) + bg.astype(jnp.float32))
    hbias = jnp.dot(ctx32, wb.astype(jnp.float32))
    # (x@W + b)*gate + hbias  ==  (x@W)*gate + (b*gate + hbias)
    fbias = b.astype(jnp.float32) * gate + hbias                         # (B, dim_out)

    # ---- lane-density guard: pad dim_out up to a multiple of 128 ----------------------
    dim_out_p = max(_LANE, _round_up(dim_out, _LANE))
    pad = dim_out_p - dim_out
    w_k = w
    if pad:
        w_k = jnp.pad(w_k, ((0, 0), (0, pad)))
        gate = jnp.pad(gate, ((0, 0), (0, pad)))
        fbias = jnp.pad(fbias, ((0, 0), (0, pad)))
    gate = gate.reshape(B, 1, dim_out_p)
    fbias = fbias.reshape(B, 1, dim_out_p)

    # ---- optional bf16 at the boundary (halves HBM traffic for x / W) -----------------
    x_k = x if mxu_dtype is None else x.astype(mxu_dtype)
    w_k = w_k if mxu_dtype is None else w_k.astype(mxu_dtype)

    x_bytes = x_k.dtype.itemsize
    w_bytes = w_k.dtype.itemsize
    out_bytes = jnp.zeros((), out_dtype).dtype.itemsize

    # ---- generation-aware tiling + explicit VMEM limit --------------------------------
    cap = _vmem_capacity_bytes()
    budget = min(int(cap * 0.7), 100 * 1024 * 1024)
    tn = _pick_tile(N, dim_in, dim_out_p, x_bytes, w_bytes, out_bytes, budget)
    grid = (B, pl.cdiv(N, tn))

    need = (dim_in * dim_out_p * w_bytes                                   # resident W
            + 2 * tn * (dim_in * x_bytes + dim_out_p * out_bytes)          # dbl-buffered x / out
            + 4 * dim_out_p * 4)                                           # gate / fused bias
    vmem_limit = int(min(budget, max(32 * 1024 * 1024, int(need * 1.5) + (4 << 20))))

    cost = pl.CostEstimate(
        flops=2 * B * N * dim_in * dim_out_p,
        transcendentals=0,                                                 # sigmoid done in wrapper
        bytes_accessed=(B * N * dim_in * x_bytes
                        + dim_in * dim_out_p * w_bytes
                        + B * N * dim_out_p * out_bytes
                        + 2 * B * dim_out_p * 4),
    )

    out = pl.pallas_call(
        _kernel,
        grid=grid,
        in_specs=[
            pl.BlockSpec((1, tn, dim_in), lambda bi, ni: (bi, ni, 0)),        # x tile
            pl.BlockSpec((dim_in, dim_out_p), lambda bi, ni: (0, 0)),         # W (resident)
            pl.BlockSpec((1, 1, dim_out_p), lambda bi, ni: (bi, 0, 0)),       # gate row
            pl.BlockSpec((1, 1, dim_out_p), lambda bi, ni: (bi, 0, 0)),       # fused bias row
        ],
        out_specs=pl.BlockSpec((1, tn, dim_out_p), lambda bi, ni: (bi, ni, 0)),
        out_shape=jax.ShapeDtypeStruct((B, N, dim_out_p), out_dtype),
        compiler_params=pltpu.CompilerParams(
            dimension_semantics=("parallel", "parallel"),
            vmem_limit_bytes=vmem_limit),
        cost_estimate=cost,
        interpret=interpret,
    )(x_k, w_k, gate, fbias)

    return out[:, :, :dim_out] if pad else out


def init_params(key, dim_in, dim_out, dim_ctx):
    """PyTorch nn.Linear-style uniform init; weights stored pre-transposed as (in, out)."""
    k = jax.random.split(key, 5)
    bnd_l = 1.0 / math.sqrt(dim_in)
    w = jax.random.uniform(k[0], (dim_in, dim_out), jnp.float32, -bnd_l, bnd_l)
    b = jax.random.uniform(k[1], (1, dim_out), jnp.float32, -bnd_l, bnd_l)
    bnd_c = 1.0 / math.sqrt(dim_ctx)
    wg = jax.random.uniform(k[2], (dim_ctx, dim_out), jnp.float32, -bnd_c, bnd_c)
    bg = jax.random.uniform(k[3], (1, dim_out), jnp.float32, -bnd_c, bnd_c)
    wb = jax.random.uniform(k[4], (dim_ctx, dim_out), jnp.float32, -bnd_c, bnd_c)
    return (w, b, wg, bg, wb)


# ------------------------- pure-JAX reference (for verification) -------------------------
def _ref_forward(ctx, x, params):
    w, b, wg, bg, wb = params
    if ctx.ndim == 2:
        ctx = ctx[:, None, :]
    gate = jax.nn.sigmoid(jnp.einsum("bqc,co->bqo", ctx, wg) + bg)        # (B, 1, dim_out)
    hbias = jnp.einsum("bqc,co->bqo", ctx, wb)                            # (B, 1, dim_out)
    y = jnp.einsum("bnd,do->bno", x, w) + b                               # (B, N, dim_out)
    return y * gate + hbias


if __name__ == "__main__":
    key = jax.random.PRNGKey(0)
    kc, kx, kp = jax.random.split(key, 3)

    B, N = 2, 16               # batch, points per batch
    DIM_IN, DIM_OUT, DIM_CTX = 32, 64, 8

    x = jax.random.normal(kx, (B, N, DIM_IN), jnp.float32)
    ctx = jax.random.normal(kc, (B, 1, DIM_CTX), jnp.float32)
    params = init_params(kp, DIM_IN, DIM_OUT, DIM_CTX)

    ref = jax.block_until_ready(_ref_forward(ctx, x, params))

    # f32 path — strict correctness check.
    out = jax.block_until_ready(concat_squash_linear(ctx, x, params))
    np.testing.assert_allclose(np.asarray(out), np.asarray(ref), rtol=1e-5, atol=1e-5)
    assert out.shape == (B, N, DIM_OUT)

    # bf16-at-the-boundary MXU path (v5e/v6e/v7x) — run + loose check (hyper-net stays f32).
    out_bf16 = jax.block_until_ready(
        concat_squash_linear(ctx, x, params, mxu_dtype=jnp.bfloat16))
    assert out_bf16.shape == (B, N, DIM_OUT)
    np.testing.assert_allclose(np.asarray(out_bf16), np.asarray(ref), rtol=5e-2, atol=5e-2)

    print("KERNEL_OK")
</pallas_src>

<mosaic_0001>
module attributes {stable_mosaic.version = 11 : i64} {
  func.func @_kernel(%arg0: i32, %arg1: i32, %arg2: memref<1x16x32xf32, #tpu.memory_space<vmem>>, %arg3: memref<32x128xf32, #tpu.memory_space<vmem>>, %arg4: memref<1x1x128xf32, #tpu.memory_space<vmem>>, %arg5: memref<1x1x128xf32, #tpu.memory_space<vmem>>, %arg6: memref<1x16x128xf32, #tpu.memory_space<vmem>>) attributes {dimension_semantics = [#tpu.dimension_semantics<parallel>, #tpu.dimension_semantics<parallel>], iteration_bounds = array<i64: 2, 1>, scalar_prefetch = 0 : i64, scratch_operands = 0 : i64, tpu.core_type = #tpu.core_type<tc>, window_params = [{transform_indices = @transform_0, window_bounds = array<i64: 1, 16, 32>}, {pipeline_mode = #tpu.pipeline_mode<synchronous>, transform_indices = @transform_1, window_bounds = array<i64: 32, 128>}, {transform_indices = @transform_2, window_bounds = array<i64: 1, 1, 128>}, {transform_indices = @transform_3, window_bounds = array<i64: 1, 1, 128>}, {transform_indices = @transform_4, window_bounds = array<i64: 1, 16, 128>}]} {
    %c0 = arith.constant 0 : index
    %c0_0 = arith.constant 0 : index
    %c0_1 = arith.constant 0 : index
    %0 = vector.load %arg2[%c0, %c0_0, %c0_1] : memref<1x16x32xf32, #tpu.memory_space<vmem>>, vector<1x16x32xf32>
    %1 = vector.shape_cast %0 : vector<1x16x32xf32> to vector<16x32xf32>
    %c0_2 = arith.constant 0 : index
    %c0_3 = arith.constant 0 : index
    %2 = vector.load %arg3[%c0_2, %c0_3] : memref<32x128xf32, #tpu.memory_space<vmem>>, vector<32x128xf32>
    %cst = arith.constant dense<0.000000e+00> : vector<16x128xf32>
    %3 = tpu.matmul %1, %2, %cst {dimension_numbers = #tpu.dot_dimension_numbers<[1], [0], [0], [1], [0, 0, 1, 1], [], []>} : vector<16x32xf32>, vector<32x128xf32>, vector<16x128xf32> -> vector<16x128xf32>
    %c0_4 = arith.constant 0 : index
    %c0_5 = arith.constant 0 : index
    %c0_6 = arith.constant 0 : index
    %4 = vector.load %arg4[%c0_4, %c0_5, %c0_6] : memref<1x1x128xf32, #tpu.memory_space<vmem>>, vector<1x1x128xf32>
    %5 = vector.shape_cast %4 : vector<1x1x128xf32> to vector<1x128xf32>
    %6 = vector.broadcast %5 : vector<1x128xf32> to vector<16x128xf32>
    %7 = arith.mulf %3, %6 : vector<16x128xf32>
    %c0_7 = arith.constant 0 : index
    %c0_8 = arith.constant 0 : index
    %c0_9 = arith.constant 0 : index
    %8 = vector.load %arg5[%c0_7, %c0_8, %c0_9] : memref<1x1x128xf32, #tpu.memory_space<vmem>>, vector<1x1x128xf32>
    %9 = vector.shape_cast %8 : vector<1x1x128xf32> to vector<1x128xf32>
    %10 = vector.broadcast %9 : vector<1x128xf32> to vector<16x128xf32>
    %11 = arith.addf %7, %10 : vector<16x128xf32>
    %c0_10 = arith.constant 0 : index
    %c0_11 = arith.constant 0 : index
    %c0_12 = arith.constant 0 : index
    %12 = vector.load %arg6[%c0_10, %c0_11, %c0_12] : memref<1x16x128xf32, #tpu.memory_space<vmem>>, vector<1x16x128xf32>
    %13 = vector.shape_cast %12 : vector<1x16x128xf32> to vector<16x128xf32>
    %14 = vector.shape_cast %11 : vector<16x128xf32> to vector<1x16x128xf32>
    tpu.vector_store %arg6[%c0_10, %c0_11, %c0_12], %14 {strides = array<i32>} : memref<1x16x128xf32, #tpu.memory_space<vmem>>, vector<1x16x128xf32>,
    return
  }
  func.func @transform_0(%arg0: i32, %arg1: i32) -> (i32, i32, i32) {
    %c0_i32 = arith.constant 0 : i32
    %c0_i32_0 = arith.constant 0 : i32
    return %arg0, %arg1, %c0_i32 : i32, i32, i32
  }
  func.func @transform_1(%arg0: i32, %arg1: i32) -> (i32, i32) {
    %c0_i32 = arith.constant 0 : i32
    %c0_i32_0 = arith.constant 0 : i32
    %c0_i32_1 = arith.constant 0 : i32
    return %c0_i32, %c0_i32_0 : i32, i32
  }
  func.func @transform_2(%arg0: i32, %arg1: i32) -> (i32, i32, i32) {
    %c0_i32 = arith.constant 0 : i32
    %c0_i32_0 = arith.constant 0 : i32
    %c0_i32_1 = arith.constant 0 : i32
    return %arg0, %c0_i32, %c0_i32_0 : i32, i32, i32
  }
  func.func @transform_3(%arg0: i32, %arg1: i32) -> (i32, i32, i32) {
    %c0_i32 = arith.constant 0 : i32
    %c0_i32_0 = arith.constant 0 : i32
    %c0_i32_1 = arith.constant 0 : i32
    return %arg0, %c0_i32, %c0_i32_0 : i32, i32, i32
  }
  func.func @transform_4(%arg0: i32, %arg1: i32) -> (i32, i32, i32) {
    %c0_i32 = arith.constant 0 : i32
    %c0_i32_0 = arith.constant 0 : i32
    return %arg0, %arg1, %c0_i32 : i32, i32, i32
  }
}

</mosaic_0001>

<bundles_post_ra>
// kernel: tpu_custom_call.1
= control target key start
LH: loop header
LB: loop body
LE: loop exit
PB: predicated region body
PF: predicated region fallthrough
CT: control target
= control target key end

     0   :  { %9 = vsyncpa [#allocation3], 0  ;;  %s1054_s0 = inlined_call_operand.hbm [shape: f32[2,16,32], index: 0, kind: input, shape index: {}]   ;;  %s1055_s1 = inlined_call_operand.hbm [shape: f32[32,128], index: 1, kind: input, shape index: {}]   ;;  %s1056_s2 = inlined_call_operand.vmem [shape: f32[2,1,128], index: 2, kind: input, shape index: {}]   ;;  %s1057_s3 = inlined_call_operand.vmem [shape: f32[2,1,128], index: 3, kind: input, shape index: {}]   ;;  %s1058_s4 = inlined_call_operand.hbm [shape: f32[2,16,128], index: 4, kind: output, shape index: {}]  }
   0x1   :  { %11 = vsyncpa [#allocation3 + $0x1], 0 }
   0x2   :  { %12 = vsyncpa [#allocation6], 0 }
   0x3   :  { %13 = vsyncpa [#allocation4], 0 }
   0x4   :  { %15 = vsyncpa [#allocation4 + $0x1], 0  ;;  %s821_s15 = smov 0   ;;  %s823_s16 = smov 0  }
   0x5   :  { %s825_s17 = smov 0   ;;  %s827_s18 = smov 0  }
   0x6   :  { %s829_s19 = smov 0   ;;  %s831_s20 = smov 0  }
   0x7 LB: > { %s518_s21 = sadd.s32 4294967295, %s787_s20   ;;  %s519_s22 = sadd.s32 4294967294, %s787_s20   ;;  %s787_s20 = sphi %s831_s20, %s21_s20   ;;  %s783_s19 = sphi %s829_s19, %s1082_s19   ;;  %s779_s18 = sphi %s827_s18, %s1081_s18   ;;  %s775_s17 = sphi %s825_s17, %s1080_s17   ;;  %s771_s16 = sphi %s823_s16, %s1079_s16   ;;  %s767_s15 = sphi %s821_s15, %s1078_s15  }
   0x8   : > { %p55_p0 = scmp.ne.s32.totalorder %s771_s16, %s767_s15  ;;  %p855_p1 = scmp.eq.s32.totalorder %s518_s21, 0 }
   0x9   : > { %p859_p2 = scmp.eq.s32.totalorder %s518_s21, 1  ;;  %p160_p3 = scmp.eq.s32.totalorder %s519_s22, 1 }
   0xa   : > { %s1063_s23 = scalar_select %p855_p1, 1, 0 }
   0xb   : > { %s1064_s24 = scalar_select %p859_p2, 1, 0 }
   0xc   : > { %p865_p4 = por %p855_p1, %p55_p0  ;;  %p520_p5 = scmp.ge.s32.totalorder %s787_s20, 1 }
   0xd   : > { %p870_p6 = por %p160_p3, %p55_p0  ;;  %p167_p7 = scmp.lt.s32.totalorder %s787_s20, 3 }
   0xe   : > { %s1065_s25 = scalar_select %p865_p4, 1, 0 }
   0xf   : > { %s1066_s26 = scalar_select %p870_p6, 1, 0 }
  0x10   : > { %p875_p8 = pnand %p520_p5, %p167_p7  ;;  %s789_s28 = smov [#allocation5]  }
  0x11   : > { %s179_s29 = sshll.u32 %s789_s28, 4  ;;  %s33_s5 = sadd.s32 1, %s783_s19  ;;  %s180_s29 = int_to_ptr.vmem [resolvable:$true] %s179_s29 }
  0x12   : > { %s1067_s27 = scalar_select %p875_p8, 1, 0 }
  0x13   : > { %p574_p9 = pneg %p875_p8  ;;  %s643_s8 = scalar_lea.hbm %s1055_s1, 512 }
  0x14   : > { %p644_p12 = scmp.ne.s32.totalorder %s1055_s1, %s643_s8  ;;  %p650_p5 = scmp.lt.u32.totalorder %s643_s8, %s1055_s1 }
  0x15   : > { %p884_p11 = pnand %p574_p9, %p855_p1 }
  0x17   : > { %p645_p13 = pneg %p884_p11 }
  0x19   : > { %p646_p0 = pnand %p645_p13, %p644_p12 }
  0x1b   : > { %p647_p3 = pneg %p646_p0 }
  0x1d   : > { %p652_p7 = pnand %p650_p5, %p647_p3 }
  0x1f   : > { %655 = shalt.err (!%p652_p7)
}
  0x20   : > { %s656_s13 = scalar_lea.vmem %s180_s29, 512  ;;  %p664_p1 = scmp.lt.s32.totalorder %s180_s29, %s180_s29 }
  0x21   : > { %p657_p9 = scmp.ne.s32.totalorder %s180_s29, %s656_s13  ;;  %p665_p4 = scmp.lt.s32.totalorder %s656_s13, %s656_s13 }
  0x23   : > { %p659_p10 = pnand %p657_p9, %p645_p13  ;;  %p666_p8 = por %p665_p4, %p664_p1 }
  0x25   : > { %p660_p6 = pneg %p659_p10 }
  0x27   : > { %p667_p2 = pnand %p666_p8, %p660_p6 }
  0x29   : > { %670 = shalt.err (!%p667_p2)
}
  0x2a   : > { %s790_s14 = smov 128   ;;  %s791_s21 = smov 8  }
  0x2b   : > { %577 = dma.hbm_to_vmem [thread:$0]  (!%p884_p11), %s1055_s1, 512, %s180_s29, [#allocation6], %s790_s14, %s790_s14, %s791_s21  }
  0x2c   : > { %p35_p1 = scmp.ge.s32.totalorder %s33_s5, 2  ;;  %s42_s6 = sadd.s32 1, %s775_s17 }
  0x2d   : > { %p49_p2 = scmp.ne.s32.totalorder %s775_s17, %s771_s16  ;;  %p50_p4 = scmp.eq.s32.totalorder %s787_s20, 0 }
  0x2e   : > { %s1084_s5 = smov (%p35_p1, %s33_s5), 0  ;;  %p1070_p8 = scmp.ne.s32.totalorder %s1064_s24, 0 }
  0x2f   : > { %p914_p6 = por %p50_p4, %p49_p2  ;;  %s37_s8 = ssub.s32 %s783_s19, %s1084_s5 }
  0x30   : > { %p920_p10 = por %p1070_p8, %p49_p2  ;;  %p587_p12 = scmp.lt.s32.totalorder %s787_s20, 2 }
  0x31   : > { %p40_p11 = scmp.eq.s32.totalorder %s37_s8, 0  ;;  %s193_s29 = sand.u32 1, %s775_s17  }
  0x32   : > { %s523_s9 = sshll.u32 %s193_s29, 4  ;;  %s539_s11 = sshll.u32 %s783_s19, 8 }
  0x33   : > { %s929_s10 = scalar_select %p40_p11, %s775_s17, %s42_s6  }
  0x34   : > { %s935_s22 = scalar_lea.hbm %s1054_s0, %s539_s11  ;;  %s197_s24 = scalar_lea.vmem [#allocation2], %s523_s9 }
  0x35   : > { %s206_s28 = sshll.u32 %s197_s24, 4  ;;  %p941_p13 = pnand %p587_p12, %p914_p6  ;;  %s937_s28 = int_to_ptr.vmem [resolvable:$true] %s206_s28 }
  0x36   : > { %s945_s6 = scalar_lea.sflag [#allocation3], %s193_s29  ;;  %s671_s12 = scalar_lea.hbm %s935_s22, 256 }
  0x37   : > { %p672_p0 = scmp.ne.s32.totalorder %s935_s22, %s671_s12  ;;  %p673_p3 = pneg %p941_p13 }
  0x38   : > { %s676_s7 = scalar_lea.hbm %s1054_s0, 512  ;;  %p677_p9 = scmp.lt.u32.totalorder %s935_s22, %s1054_s0 }
  0x39   : > { %p674_p5 = pnand %p673_p3, %p672_p0  ;;  %p678_p1 = scmp.lt.u32.totalorder %s676_s7, %s671_s12 }
  0x3a   : > { %p680_p4 = scmp.lt.u32.totalorder %s671_s12, %s935_s22 }
  0x3b   : > { %p675_p7 = pneg %p674_p5  ;;  %p679_p2 = por %p678_p1, %p677_p9 }
  0x3d   : > { %p681_p6 = por %p680_p4, %p679_p2 }
  0x3f   : > { %p682_p8 = pnand %p681_p6, %p675_p7 }
  0x41   : > { %685 = shalt.err (!%p682_p8)
}
  0x42   : > { %s686_s29 = scalar_lea.vmem %s937_s28, 256  ;;  %s792_s9 = smov [#allocation2]  }
  0x43   : > { %p687_p12 = scmp.ne.s32.totalorder %s937_s28, %s686_s29  ;;  %s691_s11 = sshll.u32 %s792_s9, 4  ;;  %s692_s11 = int_to_ptr.vmem [resolvable:$false] %s691_s11 }
  0x44   : > { %s693_s13 = scalar_lea.vmem %s692_s11, 512  ;;  %p694_p5 = scmp.lt.s32.totalorder %s937_s28, %s692_s11 }
  0x45   : > { %p689_p11 = pnand %p687_p12, %p673_p3  ;;  %p695_p9 = scmp.lt.s32.totalorder %s693_s13, %s686_s29 }
  0x47   : > { %p690_p0 = pneg %p689_p11  ;;  %p696_p1 = por %p695_p9, %p694_p5 }
  0x49   : > { %p697_p2 = pnand %p696_p1, %p690_p0 }
  0x4b   : > { %700 = shalt.err (!%p697_p2)
}
  0x4c   : > { %581 = dma.hbm_to_vmem [thread:$0]  (!%p941_p13), %s935_s22, 256, %s937_s28, %s945_s6, %s790_s14, %s790_s14, %s791_s21  }
  0x4d   : > { %p1073_p3 = scmp.ne.s32.totalorder %s1067_s27, 0 }
  0x4e   : > { %s979_s12 = sand.u32 (!%p1073_p3), 1, %s771_s16   ;;  %p1074_p7 = scmp.ne.s32.totalorder (!%p1073_p3), %s1065_s25, 0 }
  0x4f   : > { %230 = sbr.rel (%p1073_p3) target bundleno = 333 (0x14d), region = 36  ;;  %s527_s7 = sshll.u32 (!%p1073_p3), %s979_s12, 4 }
  0x50   : > { %s233_s24 = scalar_lea.sflag (!%p1073_p3), [#allocation3], %s979_s12  ;;  %s236_s29 = scalar_lea.vmem (!%p1073_p3), [#allocation2], %s527_s7 }
  0x56   : > { %754 = dma.done.wait (%p1074_p7), %s233_s24, 256  }
  0x57   : > { %756 = vsyncadd (%p1074_p7), %s233_s24, 4294967040  ;;  %p1075_p4 = scmp.ne.s32.totalorder %s1063_s23, 0 }
  0x59   : > { %758 = dma.done.wait (%p1075_p4), [#allocation6], 512  }
  0x5a   : > { %760 = vsyncadd (%p1075_p4), [#allocation6], 4294966784  ;;  %vm285_vm0 = vcmask 261120   ;;  %v281_v0 = vld [vmem:[#allocation5] sm:$0xff]  ;;  %v282_v1 = vld [vmem:[#allocation5 + $0x8] sm:$0xff]  ;;  %p272_p13 = scmp.lt.s32.totalorder %s779_s18, 1 }
  0x5b   : > { %v283_v2 = vld [vmem:[#allocation5 + $0x10] sm:$0xff]  ;;  %v558_v3 = vpack.c.bf16 %v282_v1, %v281_v0  ;;  %v284_v4 = vld [vmem:[#allocation5 + $0x18] sm:$0xff]  ;;  %s270_s8 = scalar_lea.vmem [#allocation7], %s527_s7  ;;  %s540_s9 = sshll.u32 %s779_s18, 8 }
  0x5c   : > { %v279_v5 = vld [vmem:[%s236_s29] sm:$0xff]  ;;  %v562_v6 = vpack.c.bf16 %v284_v4, %v283_v2  ;;  %v280_v7 = vld [vmem:[%s236_s29 + $0x8] sm:$0xff]  ;;  %s273_s23 = scalar_select %p272_p13, %s779_s18, 1 }
  0x5d   : > { %555 = vmatprep.mubr.msk.f32.mxu0 %vm285_vm0, %v279_v5  ;;  %559 = vmatprep.subr.bf16.mxu0 %v558_v3  ;;  %s403_s6 = sshll.u32 %s270_s8, 4  ;;  %s1005_s24 = scalar_lea.hbm %s1058_s4, %s540_s9  ;;  %s1000_s6 = int_to_ptr.vmem [resolvable:$true] %s403_s6 }
  0x5e   : > { %561 = vmatpush3.bf16.msra.mxu0 %v558_v3  ;;  %s274_s14 = scalar_lea.vmem %s1056_s2, %s273_s23  ;;  %s277_s28 = scalar_lea.vmem %s1057_s3, %s273_s23 }
  0x5f   : > { %563 = vmatprep.subr.bf16.mxu0 %v562_v6  ;;  %v532_v8 = vld [vmem:[%s274_s14] ss:$0 sm:$0xff]  ;;  %s388_s7 = scalar_lea.sflag [#allocation4], %s979_s12  ;;  %s701_s29 = scalar_lea.vmem %s1000_s6, 256 }
  0x60   : > { %v533_v10 = vld [vmem:[%s277_s28] ss:$0 sm:$0xff]  ;;  %p702_p6 = scmp.ne.s32.totalorder %s1000_s6, %s701_s29  ;;  %s793_s18 = smov [#allocation7]  }
  0x61   : > { %s705_s23 = sshll.u32 %s793_s18, 4  ;;  %s706_s23 = int_to_ptr.vmem [resolvable:$false] %s705_s23 }
  0x62   : > { %565 = vmatpush3.bf16.msra.mxu0 %v562_v6  ;;  %p703_p8 = pnand %p702_p6, %p920_p10  ;;  %s707_s25 = scalar_lea.vmem %s706_s23, 512 }
  0x63   : > { %p708_p11 = scmp.lt.s32.totalorder %s1000_s6, %s706_s23  ;;  %p709_p0 = scmp.lt.s32.totalorder %s707_s25, %s701_s29 }
  0x64   : > { %p704_p12 = pneg %p703_p8 }
  0x65   : > { %556 = vmatmul.mubr.msk.f32.vlgmr.msra.gmra.mrb[0].mxu0 %vm285_vm0, %v280_v7  ;;  %p710_p5 = por %p709_p0, %p708_p11 }
  0x67   : > { %p711_p9 = pnand %p710_p5, %p704_p12 }
 0x138   : > { %v557_v9 = vpop.f32.mrb[0].mxu0 }
 0x139   : > { %v375_v11 = vmul.f32 %v557_v9, %v532_v8  ;;  %v358_v12 = vpop.f32.mrb[1].mxu0 }
 0x13a   : > { %v374_v13 = vmul.f32 %v532_v8, %v358_v12 }
 0x13b   : > { %v384_v14 = vadd.f32 %v533_v10, %v375_v11 }
 0x13c   : > { %v383_v15 = vadd.f32 %v533_v10, %v374_v13 }
 0x13d   : > { %386 = vst [vmem:[%s270_s8 + $0x8] sm:$0xff] %v384_v14 }
 0x13e   : > { %385 = vst [vmem:[%s270_s8] sm:$0xff] %v383_v15 }
 0x13f   : > { %714 = shalt.err (!%p711_p9)
}
 0x140   : > { %s715_s27 = scalar_lea.hbm %s1005_s24, 256  ;;  %s719_s22 = scalar_lea.hbm %s1058_s4, 512 }
 0x141   : > { %p716_p1 = scmp.ne.s32.totalorder %s1005_s24, %s715_s27  ;;  %p720_p7 = scmp.lt.u32.totalorder %s1005_s24, %s1058_s4 }
 0x142   : > { %p721_p4 = scmp.lt.u32.totalorder %s719_s22, %s715_s27  ;;  %p723_p6 = scmp.lt.u32.totalorder %s715_s27, %s1005_s24 }
 0x143   : > { %p717_p2 = pnand %p716_p1, %p920_p10 }
 0x144   : > { %p722_p13 = por %p721_p4, %p720_p7 }
 0x145   : > { %p718_p3 = pneg %p717_p2 }
 0x146   : > { %p724_p8 = por %p723_p6, %p722_p13 }
 0x148   : > { %p725_p12 = pnand %p724_p8, %p718_p3 }
 0x14a   : > { %728 = shalt.err (!%p725_p12)
}
 0x14b   : > { %s794_s9 = smov 128   ;;  %s795_s11 = smov 8  }
 0x14c   : > { %572 = dma.vmem_to_hbm [thread:$0]  (%p920_p10), %s1000_s6, 256, %s1005_s24, %s388_s7, %s794_s9, %s794_s9, %s795_s11  }
 0x14d PF: > { %s418_s13 = sand.u32 1, %s767_s15   ;;  %p1076_p11 = scmp.ne.s32.totalorder %s1066_s26, 0 }
 0x14e   : > { %p1077_p0 = scmp.ge.s32.totalorder %s787_s20, 2  ;;  %s419_s29 = scalar_lea.sflag [#allocation4], %s418_s13 }
 0x150   : > { %p583_p5 = pnand %p1077_p0, %p1076_p11 }
 0x152   : > { %762 = dma.done.wait (!%p583_p5), %s419_s29, 256  }
 0x153   : > { %764 = vsyncadd (!%p583_p5), %s419_s29, 4294967040  ;;  %s21_s20 = sadd.s32 1, %s787_s20   ;;  %s1078_s15 = smov %s771_s16 }
 0x154   : > { %p18_p9 = scmp.ge.s32.totalorder %s21_s20, 4   ;;  %s1079_s16 = smov %s775_s17 }
 0x155   : > { %s1080_s17 = smov %s929_s10  ;;  %s1081_s18 = smov %s783_s19 }
 0x156   : > { %s1082_s19 = smov %s1084_s5  ;;  %20 = sbr.rel (!%p18_p9) target bundleno = 7 (0x7), region = 91 }
 0x15d   :  { %424 = vsyncpa [#allocation3], 1 }
 0x15e   :  { %426 = vsyncpa [#allocation3 + $0x1], 1 }
 0x15f   :  { %427 = vsyncpa [#allocation6], 1 }
 0x160   :  { %428 = vsyncpa [#allocation4], 1 }
 0x161   :  { %430 = vsyncpa [#allocation4 + $0x1], 1 }

</bundles_post_ra>
